<compile_context>
chip_gen: v7x
topology: tpu7x:2x2x1
jax: 0.10.0
libtpu: 0.0.40
codegen_flags: <defaults>
</compile_context>

<pallas_src>
import functools

import jax
import jax.numpy as jnp
from jax import lax
from jax.experimental import pallas as pl
from jax.experimental.pallas import tpu as pltpu


# ---------------------------------------------------------------------------
# Kernel 1: streamed spatial mean pool.  x: (N, C, HW_pad) -> pooled (N, 1, C)
# ---------------------------------------------------------------------------
def _pool_kernel(x_ref, out_ref, acc_ref, *, inv_hw: float, lane_steps: int):
    k = pl.program_id(1)

    @pl.when(k == 0)
    def _init():
        acc_ref[...] = jnp.zeros_like(acc_ref)

    # Lane-partial accumulation: pure VPU adds over 128-lane slices of the tile.
    # The single cross-lane (XLU) reduce is deferred to the epilogue, so no
    # per-step reduce/relayout/masked-store is paid.
    if lane_steps <= 8:
        for i in range(lane_steps):
            acc_ref[...] += x_ref[:, :, pl.ds(i * 128, 128)].astype(jnp.float32)
    else:
        def _body(i, carry):
            off = pl.multiple_of(i * 128, 128)
            acc_ref[...] += x_ref[:, :, pl.ds(off, 128)].astype(jnp.float32)
            return carry
        lax.fori_loop(0, lane_steps, _body, 0)

    @pl.when(k == pl.num_programs(1) - 1)
    def _epilogue():
        # Single XLU reduce + one relayout of C onto lanes, once per batch block.
        pooled = jnp.sum(acc_ref[...], axis=2) * inv_hw          # (bn, C)
        out_ref[...] = pooled[:, None, :].astype(out_ref.dtype)  # (bn, 1, C)


# ---------------------------------------------------------------------------
# Kernel 2: MLP epilogue.  pooled (N, C) -> bin centers (N, dout_p), one shot.
# ---------------------------------------------------------------------------
def _mlp_kernel(p_ref, w1_ref, b1_ref, w2_ref, b2_ref, tri_ref, out_ref,
                *, max_depth: float, min_depth: float):
    pooled = p_ref[...]                                           # (N, C) f32

    # fc1 + exact GELU (PyTorch nn.GELU default is erf-based)
    h = jnp.dot(pooled, w1_ref[...],
                preferred_element_type=jnp.float32) + b1_ref[...]
    h = jax.nn.gelu(h, approximate=False)

    # fc2 (padded bins carry a -1e30 bias -> zero probability after softmax)
    y = jnp.dot(h, w2_ref[...],
                preferred_element_type=jnp.float32) + b2_ref[...]  # (N, dout_p)

    # softmax over bins.  The PyTorch `bins / bins.sum()` renormalization is an
    # exact no-op after softmax (no eps), so it is folded away.
    y = y - jnp.max(y, axis=1, keepdims=True)
    e = jnp.exp(y)
    inv = pl.reciprocal(jnp.sum(e, axis=1, keepdims=True), approx=False)
    bins = e * inv

    # bin widths -> inclusive cumsum via MXU matmul with resident tri mask
    widths = (max_depth - min_depth) * bins                       # (N, dout_p)
    csum = jnp.dot(widths, tri_ref[...],
                   preferred_element_type=jnp.float32)            # (N, dout_p)
    # centers[i] = 0.5*(edges[i] + edges[i+1]) = min + csum[i] - 0.5*widths[i]
    out_ref[...] = (min_depth + csum - 0.5 * widths).astype(out_ref.dtype)


# ---------------------------------------------------------------------------
# Host-side helpers
# ---------------------------------------------------------------------------
def _round_up(x: int, m: int) -> int:
    return ((x + m - 1) // m) * m


def _vmem_caps():
    """Generation-aware VMEM limit and per-buffer budget for the x stream."""
    try:
        cap = int(getattr(pltpu.get_tpu_info(), "vmem_capacity_bytes", 128 << 20))
    except Exception:  # pragma: no cover - non-TPU / API drift fallback
        cap = 128 << 20
    if cap <= (64 << 20):            # v7x: 64 MiB physical
        return 48 << 20, 14 << 20
    return 96 << 20, 16 << 20        # v5e / v6e: 128 MiB physical


def _pick_bn(n: int) -> int:
    for bn in (8, 4, 2, 1):
        if n % bn == 0:
            return bn
    return 1


def _pick_hw_tile(hw: int, bn: int, c: int, itemsize: int, budget_bytes: int) -> int:
    """128-aligned tile whose (bn, C, tile) buffer fits the per-buffer budget.
    Prefers a divisor of hw (no padding); otherwise returns the budget cap and
    the wrapper zero-pads hw up to a multiple of it."""
    per_col = max(1, bn * c * itemsize)
    cap = max(128, (budget_bytes // per_col) // 128 * 128)
    hw128 = _round_up(hw, 128)
    if hw128 <= cap:
        return hw128
    if hw % 128 == 0:
        for t in range(cap, 0, -128):
            if hw % t == 0:
                return t
    return cap


# ---------------------------------------------------------------------------
# Public forward
# ---------------------------------------------------------------------------
def bcp_forward(x, w1, b1, w2, b2, *, max_depth, min_depth, hw_tile=None):
    """x: (N, C, H, W). w1: (C, hidden), w2: (hidden, dout) (nn.Linear weights
    stored transposed: y = x @ W + b). Returns (N, dout, 1, 1) like PyTorch."""
    n, c, h, w = x.shape
    hidden = w1.shape[1]
    dout = w2.shape[1]
    hw = h * w

    vmem_limit, x_budget = _vmem_caps()
    bn = _pick_bn(n)

    if hw_tile is None:
        hw_tile = _pick_hw_tile(hw, bn, c, x.dtype.itemsize, x_budget)
    assert hw_tile % 128 == 0, "hw_tile must be a multiple of 128"

    hw_pad = _round_up(hw, hw_tile)
    x_flat = x.reshape(n, c, hw)
    if hw_pad != hw:
        # Zero padding is exact for the mean: the kernel divides by the true hw.
        x_flat = jnp.pad(x_flat, ((0, 0), (0, 0), (0, hw_pad - hw)))
    num_hw_tiles = hw_pad // hw_tile

    # --- Kernel 1: streaming pooled mean --------------------------------------
    pooled = pl.pallas_call(
        functools.partial(_pool_kernel,
                          inv_hw=1.0 / float(hw),
                          lane_steps=hw_tile // 128),
        out_shape=jax.ShapeDtypeStruct((n, 1, c), jnp.float32),
        grid_spec=pltpu.PrefetchScalarGridSpec(
            num_scalar_prefetch=0,
            grid=(n // bn, num_hw_tiles),
            in_specs=[pl.BlockSpec((bn, c, hw_tile), lambda b, k: (b, 0, k))],
            out_specs=pl.BlockSpec((bn, 1, c), lambda b, k: (b, 0, 0)),
            scratch_shapes=[pltpu.VMEM((bn, c, 128), jnp.float32)],
        ),
        compiler_params=pltpu.CompilerParams(
            dimension_semantics=("parallel", "arbitrary"),
            vmem_limit_bytes=vmem_limit,
        ),
    )(x_flat)
    pooled2d = pooled.reshape(n, c)

    # --- Pad bins to a lane-dense multiple of 128 ------------------------------
    dout_p = _round_up(dout, 128)
    w2p, b2p = w2, b2
    if dout_p != dout:
        w2p = jnp.pad(w2, ((0, 0), (0, dout_p - dout)))
        b2p = jnp.pad(b2, ((0, dout_p - dout),), constant_values=-1e30)

    # Hoisted upper-triangular mask for the MXU inclusive cumsum.
    tri = (jax.lax.broadcasted_iota(jnp.int32, (dout_p, dout_p), 0)
           <= jax.lax.broadcasted_iota(jnp.int32, (dout_p, dout_p), 1)
           ).astype(jnp.float32)

    # --- Kernel 2: one-shot MLP epilogue (M = N on the MXU) --------------------
    centers_p = pl.pallas_call(
        functools.partial(_mlp_kernel,
                          max_depth=float(max_depth),
                          min_depth=float(min_depth)),
        out_shape=jax.ShapeDtypeStruct((n, dout_p), jnp.float32),
        grid_spec=pltpu.PrefetchScalarGridSpec(
            num_scalar_prefetch=0,
            grid=(1,),
            in_specs=[
                pl.BlockSpec((n, c), lambda i: (0, 0)),
                pl.BlockSpec((c, hidden), lambda i: (0, 0)),
                pl.BlockSpec((1, hidden), lambda i: (0, 0)),
                pl.BlockSpec((hidden, dout_p), lambda i: (0, 0)),
                pl.BlockSpec((1, dout_p), lambda i: (0, 0)),
                pl.BlockSpec((dout_p, dout_p), lambda i: (0, 0)),
            ],
            out_specs=pl.BlockSpec((n, dout_p), lambda i: (0, 0)),
        ),
        compiler_params=pltpu.CompilerParams(
            dimension_semantics=("arbitrary",),
            vmem_limit_bytes=vmem_limit,
        ),
    )(pooled2d, w1, b1.reshape(1, hidden), w2p.astype(jnp.float32),
      b2p.reshape(1, dout_p).astype(jnp.float32), tri)

    return centers_p[:, :dout].reshape(n, dout, 1, 1)


# ---------------------------------------------------------------------------
# Pure-JAX reference (mirrors the PyTorch module)
# ---------------------------------------------------------------------------
def _bcp_reference(x, w1, b1, w2, b2, *, max_depth, min_depth):
    n, c, h, w = x.shape
    pooled = jnp.mean(x.reshape(n, c, h * w), axis=2)
    hdn = jax.nn.gelu(pooled @ w1 + b1, approximate=False)
    y = hdn @ w2 + b2
    bins = jax.nn.softmax(y, axis=1)
    bins = bins / jnp.sum(bins, axis=1, keepdims=True)
    widths = (max_depth - min_depth) * bins
    widths = jnp.pad(widths, ((0, 0), (1, 0)), constant_values=min_depth)
    edges = jnp.cumsum(widths, axis=1)
    centers = 0.5 * (edges[:, :-1] + edges[:, 1:])
    return centers.reshape(n, -1, 1, 1)


if __name__ == "__main__":
    # Small, module-consistent shapes: batch=2, in_features=32 channels,
    # 16x16 spatial (HW=256), hidden=4*in=128, out_features=128 bins.
    N, C, H, W = 2, 32, 16, 16
    HIDDEN, OUT = 4 * C, 128
    MAX_DEPTH, MIN_DEPTH = 10.0, 1e-3

    key = jax.random.PRNGKey(0)
    kx, k1, k2, k3, k4 = jax.random.split(key, 5)
    x = jax.random.normal(kx, (N, C, H, W), dtype=jnp.float32)
    # nn.Linear-style parameters, stored transposed: y = x @ W + b.
    w1 = jax.random.normal(k1, (C, HIDDEN), dtype=jnp.float32) * 0.05
    b1 = jax.random.normal(k2, (HIDDEN,), dtype=jnp.float32) * 0.05
    w2 = jax.random.normal(k3, (HIDDEN, OUT), dtype=jnp.float32) * 0.05
    b2 = jax.random.normal(k4, (OUT,), dtype=jnp.float32) * 0.05

    # Force hw_tile=128 so the multi-step streamed reduction path is exercised.
    out = bcp_forward(x, w1, b1, w2, b2,
                      max_depth=MAX_DEPTH, min_depth=MIN_DEPTH, hw_tile=128)
    out = jax.block_until_ready(out)

    ref = _bcp_reference(x, w1, b1, w2, b2,
                         max_depth=MAX_DEPTH, min_depth=MIN_DEPTH)
    assert out.shape == (N, OUT, 1, 1), out.shape
    assert jnp.allclose(out, ref, atol=1e-5, rtol=1e-5), float(
        jnp.max(jnp.abs(out - ref)))

    print("KERNEL_OK")
</pallas_src>

<mosaic_0001>
module attributes {stable_mosaic.version = 11 : i64} {
  func.func @_pool_kernel(%arg0: i32, %arg1: i32, %arg2: memref<2x32x128xf32, #tpu.memory_space<vmem>>, %arg3: memref<2x1x32xf32, #tpu.memory_space<vmem>>, %arg4: memref<2x32x128xf32, #tpu.memory_space<vmem>>) attributes {dimension_semantics = [#tpu.dimension_semantics<parallel>, #tpu.dimension_semantics<arbitrary>], iteration_bounds = array<i64: 1, 2>, scalar_prefetch = 0 : i64, scratch_operands = 1 : i64, tpu.core_type = #tpu.core_type<tc>, window_params = [{transform_indices = @transform_0, window_bounds = array<i64: 2, 32, 128>}, {transform_indices = @transform_1, window_bounds = array<i64: 2, 1, 32>}]} {
    %c0_i32 = arith.constant 0 : i32
    %0 = arith.cmpi eq, %arg1, %c0_i32 : i32
    %1 = arith.extui %0 : i1 to i32
    %c0_i32_0 = arith.constant 0 : i32
    %2 = arith.cmpi ne, %1, %c0_i32_0 : i32
    scf.if %2 {
      %cst = arith.constant 0.000000e+00 : f32
      %10 = vector.broadcast %cst : f32 to vector<2x32x128xf32>
      %c0_10 = arith.constant 0 : index
      %c0_11 = arith.constant 0 : index
      %c0_12 = arith.constant 0 : index
      %11 = vector.load %arg4[%c0_10, %c0_11, %c0_12] : memref<2x32x128xf32, #tpu.memory_space<vmem>>, vector<2x32x128xf32>
      tpu.vector_store %arg4[%c0_10, %c0_11, %c0_12], %10 {strides = array<i32>} : memref<2x32x128xf32, #tpu.memory_space<vmem>>, vector<2x32x128xf32>,
    } else {
    }
    %c0 = arith.constant 0 : index
    %c0_1 = arith.constant 0 : index
    %c0_2 = arith.constant 0 : index
    %3 = vector.load %arg4[%c0, %c0_1, %c0_2] : memref<2x32x128xf32, #tpu.memory_space<vmem>>, vector<2x32x128xf32>
    %c0_3 = arith.constant 0 : index
    %c0_4 = arith.constant 0 : index
    %c0_5 = arith.constant 0 : index
    %4 = vector.load %arg2[%c0_3, %c0_4, %c0_5] : memref<2x32x128xf32, #tpu.memory_space<vmem>>, vector<2x32x128xf32>
    %5 = arith.addf %3, %4 : vector<2x32x128xf32>
    %c0_6 = arith.constant 0 : index
    %c0_7 = arith.constant 0 : index
    %c0_8 = arith.constant 0 : index
    %6 = vector.load %arg4[%c0_6, %c0_7, %c0_8] : memref<2x32x128xf32, #tpu.memory_space<vmem>>, vector<2x32x128xf32>
    tpu.vector_store %arg4[%c0_6, %c0_7, %c0_8], %5 {strides = array<i32>} : memref<2x32x128xf32, #tpu.memory_space<vmem>>, vector<2x32x128xf32>,
    %c1_i32 = arith.constant 1 : i32
    %7 = arith.cmpi eq, %arg1, %c1_i32 : i32
    %8 = arith.extui %7 : i1 to i32
    %c0_i32_9 = arith.constant 0 : i32
    %9 = arith.cmpi ne, %8, %c0_i32_9 : i32
    scf.if %9 {
      %c0_10 = arith.constant 0 : index
      %c0_11 = arith.constant 0 : index
      %c0_12 = arith.constant 0 : index
      %10 = vector.load %arg4[%c0_10, %c0_11, %c0_12] : memref<2x32x128xf32, #tpu.memory_space<vmem>>, vector<2x32x128xf32>
      %cst = arith.constant dense<0.000000e+00> : vector<2x32xf32>
      %11 = vector.multi_reduction <add>, %10, %cst [2] : vector<2x32x128xf32> to vector<2x32xf32>
      %cst_13 = arith.constant 3.906250e-03 : f32
      %12 = vector.broadcast %cst_13 : f32 to vector<2x32xf32>
      %13 = arith.mulf %11, %12 : vector<2x32xf32>
      %14 = vector.shape_cast %13 : vector<2x32xf32> to vector<2x1x32xf32>
      %c0_14 = arith.constant 0 : index
      %c0_15 = arith.constant 0 : index
      %c0_16 = arith.constant 0 : index
      %15 = vector.load %arg3[%c0_14, %c0_15, %c0_16] : memref<2x1x32xf32, #tpu.memory_space<vmem>>, vector<2x1x32xf32>
      tpu.vector_store %arg3[%c0_14, %c0_15, %c0_16], %14 {strides = array<i32>} : memref<2x1x32xf32, #tpu.memory_space<vmem>>, vector<2x1x32xf32>,
    } else {
    }
    return
  }
  func.func @transform_0(%arg0: i32, %arg1: i32) -> (i32, i32, i32) {
    %c0_i32 = arith.constant 0 : i32
    %c0_i32_0 = arith.constant 0 : i32
    return %arg0, %c0_i32, %arg1 : i32, i32, i32
  }
  func.func @transform_1(%arg0: i32, %arg1: i32) -> (i32, i32, i32) {
    %c0_i32 = arith.constant 0 : i32
    %c0_i32_0 = arith.constant 0 : i32
    %c0_i32_1 = arith.constant 0 : i32
    return %arg0, %c0_i32, %c0_i32_0 : i32, i32, i32
  }
}

</mosaic_0001>

<bundles_post_ra>
// kernel: tpu_custom_call.1
= control target key start
LH: loop header
LB: loop body
LE: loop exit
PB: predicated region body
PF: predicated region fallthrough
CT: control target
= control target key end

     0   :  { %6 = vsyncpa [#allocation4], 0  ;;  %s736_s0 = inlined_call_operand.hbm [shape: f32[2,32,256], index: 0, kind: input, shape index: {}]   ;;  %s737_s1 = inlined_call_operand.hbm [shape: f32[2,1,32], index: 1, kind: output, shape index: {}]  }
   0x1   :  { %8 = vsyncpa [#allocation4 + $0x1], 0 }
   0x2   :  { %9 = vsyncpa [#allocation5], 0  ;;  %s571_s6 = smov 0   ;;  %s573_s7 = smov 0  }
   0x3   :  { %s575_s8 = smov 0   ;;  %s577_s9 = smov 0  }
   0x4   :  { %s579_s10 = smov 0   ;;  %s581_s11 = smov 0  }
   0x5 LB: > { %s360_s12 = sadd.s32 4294967295, %s551_s11   ;;  %s24_s13 = sadd.s32 1, %s547_s10  ;;  %s551_s11 = sphi %s581_s11, %s15_s11   ;;  %s547_s10 = sphi %s579_s10, %s747_s10   ;;  %s543_s9 = sphi %s577_s9, %s746_s9   ;;  %s539_s8 = sphi %s575_s8, %s745_s8   ;;  %s535_s7 = sphi %s573_s7, %s744_s7   ;;  %s531_s6 = sphi %s571_s6, %s743_s6  }
   0x6   : > { %p25_p0 = scmp.ge.s32.totalorder %s24_s13, 2  ;;  %s36_s14 = sadd.s32 1, %s539_s8 }
   0x7   : > { %p43_p1 = scmp.ne.s32.totalorder %s539_s8, %s535_s7  ;;  %p44_p2 = scmp.eq.s32.totalorder %s551_s11, 0 }
   0x8   : > { %s749_s13 = smov (%p25_p0, %s24_s13), 0  ;;  %p49_p4 = scmp.ne.s32.totalorder %s535_s7, %s531_s6 }
   0x9   : > { %p607_p3 = por %p44_p2, %p43_p1  ;;  %s32_s16 = ssub.s32 %s547_s10, %s749_s13 }
   0xa   : > { %p50_p5 = scmp.eq.s32.totalorder %s360_s12, 0  ;;  %p34_p6 = scmp.eq.s32.totalorder %s32_s16, 0 }
   0xb   : > { %p383_p8 = scmp.lt.s32.totalorder %s551_s11, 2  ;;  %s99_s19 = sand.u32 1, %s539_s8  }
   0xc   : > { %p616_p7 = por %p50_p5, %p49_p4  ;;  %s364_s20 = sshll.u32 %s547_s10, 7 }
   0xd   : > { %s622_s18 = scalar_select %p34_p6, %s539_s8, %s36_s14  }
   0xe   : > { %s363_s21 = sshll.u32 %s99_s19, 6  ;;  %s629_s24 = scalar_lea.hbm %s736_s0, %s364_s20 }
   0xf   : > { %s103_s25 = scalar_lea.vmem [#allocation3], %s363_s21  ;;  %p633_p9 = pnand %p383_p8, %p607_p3 }
  0x10   : > { %s112_s26 = sshll.u32 %s103_s25, 4  ;;  %s640_s28 = scalar_lea.sflag [#allocation4], %s99_s19  ;;  %s637_s26 = int_to_ptr.vmem [resolvable:$true] %s112_s26 }
  0x11   : > { %s441_s29 = scalar_lea.hbm %s629_s24, 1024  ;;  %p443_p12 = pneg %p633_p9 }
  0x12   : > { %p442_p11 = scmp.ne.s32.totalorder %s629_s24, %s441_s29  ;;  %s446_s3 = scalar_lea.hbm %s736_s0, 2048 }
  0x13   : > { %p447_p1 = scmp.lt.u32.totalorder %s629_s24, %s736_s0  ;;  %p448_p2 = scmp.lt.u32.totalorder %s446_s3, %s441_s29 }
  0x14   : > { %p444_p13 = pnand %p443_p12, %p442_p11  ;;  %p450_p4 = scmp.lt.u32.totalorder %s441_s29, %s629_s24 }
  0x15   : > { %p449_p3 = por %p448_p2, %p447_p1 }
  0x16   : > { %p445_p0 = pneg %p444_p13 }
  0x17   : > { %p451_p5 = por %p450_p4, %p449_p3 }
  0x19   : > { %p452_p6 = pnand %p451_p5, %p445_p0 }
  0x1b   : > { %455 = shalt.err (!%p452_p6)
}
  0x1c   : > { %s456_s6 = scalar_lea.vmem %s637_s26, 1024  ;;  %s553_s14 = smov [#allocation3]  }
  0x1d   : > { %p457_p8 = scmp.ne.s32.totalorder %s637_s26, %s456_s6  ;;  %s461_s15 = sshll.u32 %s553_s14, 4  ;;  %s462_s15 = int_to_ptr.vmem [resolvable:$false] %s461_s15 }
  0x1e   : > { %s463_s16 = scalar_lea.vmem %s462_s15, 2048  ;;  %p464_p10 = scmp.lt.s32.totalorder %s637_s26, %s462_s15 }
  0x1f   : > { %p459_p11 = pnand %p457_p8, %p443_p12  ;;  %p465_p1 = scmp.lt.s32.totalorder %s463_s16, %s456_s6 }
  0x21   : > { %p460_p13 = pneg %p459_p11  ;;  %p466_p2 = por %p465_p1, %p464_p10 }
  0x23   : > { %p467_p3 = pnand %p466_p2, %p460_p13 }
  0x25   : > { %470 = shalt.err (!%p467_p3)
}
  0x26   : > { %s554_s19 = smov 256   ;;  %s555_s20 = smov 128  }
  0x27   : > { %s556_s21 = smov 8   ;;  %p120_p12 = scmp.lt.s32.totalorder %s551_s11, 3 }
  0x28   : > { %382 = dma.hbm_to_vmem [thread:$0]  (!%p633_p9), %s629_s24, 1024, %s637_s26, %s640_s28, %s554_s19, %s555_s20, %s556_s21  }
  0x29   : > { %p741_p0 = scmp.ge.s32.totalorder %s551_s11, 1 }
  0x2b   : > { %p121_p4 = pnand %p741_p0, %p120_p12 }
  0x2c   : > { %s126_s22 = sand.u32 (!%p121_p4), 1, %s535_s7  }
  0x2d   : > { %124 = sbr.rel (%p121_p4) target bundleno = 262 (0x106), region = 24  ;;  %s366_s23 = sshll.u32 (!%p121_p4), %s126_s22, 6 }
  0x2e   : > { %s127_s25 = scalar_lea.sflag (!%p121_p4), [#allocation4], %s126_s22  ;;  %s672_s29 = scalar_lea.vmem (!%p121_p4), [#allocation3], %s366_s23 }
  0x34   : > { %522 = dma.done.wait (%p616_p7), %s127_s25, 1024  }
  0x35   : > { %524 = vsyncadd (%p616_p7), %s127_s25, 4294966272  ;;  %p367_p10 = scmp.ne.s32.totalorder %s543_s9, 0 }
  0x36   : > { %v557_v0 = vmov (!%p367_p10), 0.0  }
  0x37   : > { %149 = sbr.rel (%p367_p10) target bundleno = 62 (0x3e), region = 32  ;;  %150 = vst [vmem:[#allocation2] sm:$0xff] (!%p367_p10), %v557_v0  ;;  %151 = vst [vmem:[#allocation2 + $0x8] sm:$0xff] (!%p367_p10), %v557_v0 }
  0x38   : > { %152 = vst [vmem:[#allocation2 + $0x10] sm:$0xff] (!%p367_p10), %v557_v0  ;;  %153 = vst [vmem:[#allocation2 + $0x18] sm:$0xff] (!%p367_p10), %v557_v0 }
  0x39   : > { %154 = vst [vmem:[#allocation2 + $0x20] sm:$0xff] (!%p367_p10), %v557_v0  ;;  %155 = vst [vmem:[#allocation2 + $0x28] sm:$0xff] (!%p367_p10), %v557_v0 }
  0x3a   : > { %156 = vst [vmem:[#allocation2 + $0x30] sm:$0xff] (!%p367_p10), %v557_v0  ;;  %157 = vst [vmem:[#allocation2 + $0x38] sm:$0xff] (!%p367_p10), %v557_v0 }
  0x3e PF: > { %v158_v1 = vld [vmem:[#allocation2] sm:$0xff]  ;;  %v159_v3 = vld [vmem:[#allocation2 + $0x8] sm:$0xff]  ;;  %v168_v7 = vld [vmem:[%s672_s29 + $0x10] sm:$0xff]  ;;  %p368_p7 = scmp.ne.s32.totalorder %s543_s9, 1 }
  0x3f   : > { %v166_v2 = vld [vmem:[%s672_s29] sm:$0xff]  ;;  %v167_v5 = vld [vmem:[%s672_s29 + $0x8] sm:$0xff]  ;;  %v160_v6 = vld [vmem:[#allocation2 + $0x10] sm:$0xff]  ;;  %v234_v33 = vlaneseq (!%p368_p7)  ;;  %vm245_vm0 = vcmask (!%p368_p7), 130112   ;;  %vm252_vm1 = vcmask (!%p368_p7), 195712   ;;  %vm259_vm2 = vcmask (!%p368_p7), 261312  }
  0x40   : > { %v174_v4 = vadd.f32 %v166_v2, %v158_v1  ;;  %v175_v8 = vadd.f32 %v167_v5, %v159_v3  ;;  %v176_v9 = vadd.f32 %v168_v7, %v160_v6  ;;  %v161_v10 = vld [vmem:[#allocation2 + $0x18] sm:$0xff]  ;;  %v162_v12 = vld [vmem:[#allocation2 + $0x20] sm:$0xff]  ;;  %v163_v15 = vld [vmem:[#allocation2 + $0x28] sm:$0xff]  ;;  %193 = sbr.rel (%p368_p7) target bundleno = 236 (0xec), region = 36  ;;  %vm282_vm3 = vcmask (!%p368_p7), 253952  }
  0x41   : > { %v169_v11 = vld [vmem:[%s672_s29 + $0x18] sm:$0xff]  ;;  %v170_v14 = vld [vmem:[%s672_s29 + $0x20] sm:$0xff]  ;;  %v171_v16 = vld [vmem:[%s672_s29 + $0x28] sm:$0xff]  ;;  %v235_v36 = vand.u32 (!%p368_p7), 127, %v234_v33  ;;  %v237_v38 = vshrl.u32 (!%p368_p7), %v234_v33, 7 }
  0x42   : > { %182 = vst [vmem:[#allocation2] sm:$0xff] %v174_v4  ;;  %v177_v13 = vadd.f32 %v169_v11, %v161_v10  ;;  %183 = vst [vmem:[#allocation2 + $0x8] sm:$0xff] %v175_v8  ;;  %v178_v17 = vadd.f32 %v170_v14, %v162_v12  ;;  %v179_v18 = vadd.f32 %v171_v16, %v163_v15  ;;  %v164_v19 = vld [vmem:[#allocation2 + $0x30] sm:$0xff]  ;;  %v165_v21 = vld [vmem:[#allocation2 + $0x38] sm:$0xff] }
  0x43   : > { %184 = vst [vmem:[#allocation2 + $0x10] sm:$0xff] %v176_v9  ;;  %v172_v20 = vld [vmem:[%s672_s29 + $0x30] sm:$0xff]  ;;  %v173_v23 = vld [vmem:[%s672_s29 + $0x38] sm:$0xff]  ;;  %v240_v37 = vadd.s32 (!%p368_p7), 4294967288, %v235_v36  ;;  %v247_v41 = vadd.s32 (!%p368_p7), 4294967280, %v235_v36  ;;  %v254_v45 = vadd.s32 (!%p368_p7), 4294967272, %v235_v36  ;;  %v238_v46 = vsub.s32 (!%p368_p7), %v235_v36, %v237_v38 }
  0x44   : > { %185 = vst [vmem:[#allocation2 + $0x18] sm:$0xff] %v177_v13  ;;  %v180_v22 = vadd.f32 %v172_v20, %v164_v19  ;;  %186 = vst [vmem:[#allocation2 + $0x20] sm:$0xff] %v178_v17  ;;  %v181_v24 = vadd.f32 %v173_v23, %v165_v21 }
  0x45   : > { %187 = vst [vmem:[#allocation2 + $0x28] sm:$0xff] %v179_v18  ;;  %v243_v42 = vsub.s32 (!%p368_p7), %v240_v37, %v237_v38  ;;  %v250_v47 = vsub.s32 (!%p368_p7), %v247_v41, %v237_v38  ;;  %v257_v56 = vsub.s32 (!%p368_p7), %v254_v45, %v237_v38 }
  0x46   : > { %188 = vst [vmem:[#allocation2 + $0x30] sm:$0xff] %v180_v22  ;;  %189 = vst [vmem:[#allocation2 + $0x38] sm:$0xff] %v181_v24 }
  0x49   : > { %v194_v26 = vld [vmem:[#allocation2] sm:$0xff]  ;;  %v195_v28 = vld [vmem:[#allocation2 + $0x8] sm:$0xff] }
  0x4a   : > { %202 = vadd.xlane.f32.xlu0 %v194_v26  ;;  %v196_v30 = vld [vmem:[#allocation2 + $0x10] sm:$0xff] }
  0x4b   : > { %v198_v25 = vld [vmem:[#allocation2 + $0x20] sm:$0xff]  ;;  %v197_v32 = vld [vmem:[#allocation2 + $0x18] sm:$0xff] }
  0x4c   : > { %210 = vadd.xlane.f32.xlu1 %v198_v25  ;;  %v199_v27 = vld [vmem:[#allocation2 + $0x28] sm:$0xff] }
  0x4d   : > { %v200_v29 = vld [vmem:[#allocation2 + $0x30] sm:$0xff]  ;;  %v201_v31 = vld [vmem:[#allocation2 + $0x38] sm:$0xff] }
  0x4e   : > { %204 = vadd.xlane.f32.xlu0 %v195_v28 }
  0x50   : > { %212 = vadd.xlane.f32.xlu1 %v199_v27 }
  0x52   : > { %206 = vadd.xlane.f32.xlu0 %v196_v30 }
  0x54   : > { %214 = vadd.xlane.f32.xlu1 %v200_v29 }
  0x56   : > { %208 = vadd.xlane.f32.xlu0 %v197_v32 }
  0x58   : > { %216 = vadd.xlane.f32.xlu1 %v201_v31 }
  0xd7   : > { %v203_v35 = vpop.xlane.xlu0 %202 }
  0xd8   : > { %v218_v51 = vmul.f32 0.00390625, %v203_v35 }
  0xd9   : > { %v211_v34 = vpop.xlane.xlu1 %210 }
  0xda   : > { %v222_v50 = vmul.f32 0.00390625, %v211_v34  ;;  %v239_v62 = vrot.slane %v218_v51, %v238_v46 }
  0xdb   : > { %v205_v40 = vpop.xlane.xlu0 %204 }
  0xdc   : > { %v219_v44 = vmul.f32 0.00390625, %v205_v40  ;;  %v264_v61 = vrot.slane %v222_v50, %v238_v46 }
  0xdd   : > { %v213_v39 = vpop.xlane.xlu1 %212 }
  0xde   : > { %v223_v43 = vmul.f32 0.00390625, %v213_v39  ;;  %v244_v55 = vrot.slane %v219_v44, %v243_v42 }
  0xdf   : > { %v207_v49 = vpop.xlane.xlu0 %206 }
  0xe0   : > { %v220_v53 = vmul.f32 0.00390625, %v207_v49  ;;  %v268_v54 = vrot.slane %v223_v43, %v243_v42  ;;  %v246_v2 = vsel %vm245_vm0, %v244_v55, %v239_v62 }
  0xe1   : > { %v215_v48 = vpop.xlane.xlu1 %214 }
  0xe2   : > { %v224_v52 = vmul.f32 0.00390625, %v215_v48  ;;  %v251_v58 = vrot.slane %v220_v53, %v250_v47  ;;  %v269_v1 = vsel %vm245_vm0, %v268_v54, %v264_v61 }
  0xe3   : > { %v209_v60 = vpop.xlane.xlu0 %208 }
  0xe4   : > { %v273_v57 = vrot.slane %v224_v52, %v250_v47  ;;  %v221_v0 = vmul.f32 0.00390625, %v209_v60  ;;  %v253_v6 = vsel %vm252_vm1, %v251_v58, %v246_v2 }
  0xe5   : > { %v217_v59 = vpop.xlane.xlu1 %216 }
  0xe6   : > { %v225_v63 = vmul.f32 0.00390625, %v217_v59  ;;  %v258_v4 = vrot.slane %v221_v0, %v257_v56  ;;  %v274_v5 = vsel %vm252_vm1, %v273_v57, %v269_v1 }
  0xe8   : > { %v278_v3 = vrot.slane %v225_v63, %v257_v56  ;;  %v260_v8 = vsel %vm259_vm2, %v258_v4, %v253_v6 }
  0xe9   : > { %283 = vst.msk [vmem:[#allocation6] sm:$0x1] %vm282_vm3, %v260_v8 }
  0xea   : > { %v279_v7 = vsel %vm259_vm2, %v278_v3, %v274_v5 }
  0xeb   : > { %284 = vst.msk [vmem:[#allocation6 + $0x1] sm:$0x1] %vm282_vm3, %v279_v7 }
  0xec PF: > { %p692_p9 = scmp.eq.s32.totalorder %s360_s12, 1  ;;  %s558_s17 = smov [#allocation6]  }
  0xed   : > { %s294_s24 = sshll.u32 %s558_s17, 4  ;;  %s295_s24 = int_to_ptr.vmem [resolvable:$true] %s294_s24 }
  0xee   : > { %s471_s26 = scalar_lea.vmem %s295_s24, 32  ;;  %p478_p11 = scmp.lt.s32.totalorder %s295_s24, %s295_s24 }
  0xef   : > { %p472_p5 = scmp.ne.s32.totalorder %s295_s24, %s471_s26  ;;  %p479_p13 = scmp.lt.s32.totalorder %s471_s26, %s471_s26 }
  0xf1   : > { %p473_p6 = pnand %p472_p5, %p692_p9  ;;  %p480_p1 = por %p479_p13, %p478_p11 }
  0xf3   : > { %p474_p8 = pneg %p473_p6 }
  0xf5   : > { %p481_p2 = pnand %p480_p1, %p474_p8 }
  0xf7   : > { %484 = shalt.err (!%p481_p2)
}
  0xf8   : > { %s485_s12 = scalar_lea.hbm %s737_s1, 32 }
  0xf9   : > { %p486_p3 = scmp.ne.s32.totalorder %s737_s1, %s485_s12  ;;  %p491_p4 = scmp.lt.u32.totalorder %s485_s12, %s737_s1 }
  0xfb   : > { %p487_p12 = pnand %p486_p3, %p692_p9 }
  0xfd   : > { %p488_p0 = pneg %p487_p12 }
  0xff   : > { %p493_p10 = pnand %p491_p4, %p488_p0 }
 0x101   : > { %496 = shalt.err (!%p493_p10)
}
 0x102   : > { %s559_s5 = smov 16   ;;  %s560_s6 = smov 1  }
 0x103   : > { %376 = dma.vmem_to_hbm [thread:$0]  (%p692_p9), %s295_s24, 32, %s737_s1, [#allocation5], %s559_s5, %s559_s5, %s560_s6  }
 0x104   : > { %526 = dma.done.wait (%p692_p9), [#allocation5], 32  }
 0x105   : > { %528 = vsyncadd (%p692_p9), [#allocation5], 4294967264 }
 0x106 PF: > { %s15_s11 = sadd.s32 1, %s551_s11   ;;  %s743_s6 = smov %s535_s7 }
 0x107   : > { %p12_p7 = scmp.ge.s32.totalorder %s15_s11, 4   ;;  %s744_s7 = smov %s539_s8 }
 0x108   : > { %s745_s8 = smov %s622_s18  ;;  %s746_s9 = smov %s547_s10 }
 0x109   : > { %s747_s10 = smov %s749_s13  ;;  %14 = sbr.rel (!%p12_p7) target bundleno = 5 (0x5), region = 70 }
 0x110   :  { %310 = vsyncpa [#allocation4], 1 }
 0x111   :  { %312 = vsyncpa [#allocation4 + $0x1], 1 }
 0x112   :  { %313 = vsyncpa [#allocation5], 1 }
 0x113   :  { %315 = vsyncpa [#allocation5 + $0x1], 1 }

</bundles_post_ra>
